<compile_context>
chip_gen: v6e
topology: v6e:2x2x1
jax: 0.10.0
libtpu: 0.0.40
codegen_flags: <defaults>
</compile_context>

<pallas_src>
import jax
import jax.numpy as jnp
from jax.experimental import pallas as pl
from jax.experimental.pallas import tpu as pltpu

_LANE = 128
_SUBLANE = 8
_X_LARGE = 20.0                       # above this, tanh(softplus(x)) == 1 in f32
_TARGET_BLOCK_BYTES = 8 * 1024 * 1024
_VMEM_LIMIT_BYTES = 48 * 1024 * 1024  # 4 * 8 MiB buffers + Mosaic scratch headroom
_MIN_PALLAS_ELEMENTS = 1 << 20        # below this, fusable plain-jnp is faster


def _mish_jnp(x):
    """Plain-jnp Mish (reference, small-tensor fallback, and misaligned tail)."""
    return x * jnp.tanh(jax.nn.softplus(x))


def _mish_kernel(x_ref, o_ref):
    xf = x_ref[...].astype(jnp.float32)
    # tanh(softplus(x)) = t*(t+2) / (t*(t+2) + 2), with t = exp(x).
    t = jnp.exp(jnp.minimum(xf, _X_LARGE))      # clamp so exp never overflows
    u = t * (t + 2.0)
    d = u + 2.0
    r = pl.reciprocal(d, approx=True)           # EUP vrcp
    r = r * (2.0 - d * r)                       # one Newton step (spare VPU slots)
    y = xf * (u * r)
    y = jnp.where(xf > _X_LARGE, xf, y)         # mish(x) -> x exactly for large x
    o_ref[...] = y.astype(o_ref.dtype)


def _round_up(v, m):
    return ((v + m - 1) // m) * m


def _choose_block_rows(n_rows, itemsize, target_block_bytes):
    """Byte-based block sizing; >=2 grid steps when the tensor allows it."""
    # Sublane-packing-aware row multiple: 8 for f32, 16 for bf16, 32 for 8-bit.
    sub = _SUBLANE * max(1, 4 // itemsize)
    max_rows = max(sub, (target_block_bytes // (_LANE * itemsize)) // sub * sub)
    if n_rows > max_rows:
        return max_rows
    if n_rows >= 2 * sub:
        # Whole tensor fits in one byte-sized block; still split into >= 2 grid
        # steps so the "parallel" axis can span both v7x TensorCores.
        return min(max_rows, _round_up(pl.cdiv(n_rows, 2), sub))
    return n_rows  # tiny: single full-extent block


def _mish_pallas_2d(x2d, total_elems):
    n_rows, _ = x2d.shape
    itemsize = jnp.dtype(x2d.dtype).itemsize
    tr = _choose_block_rows(n_rows, itemsize, _TARGET_BLOCK_BYTES)
    grid = (pl.cdiv(n_rows, tr),)
    return pl.pallas_call(
        _mish_kernel,
        out_shape=jax.ShapeDtypeStruct((n_rows, _LANE), x2d.dtype),
        grid_spec=pltpu.PrefetchScalarGridSpec(
            num_scalar_prefetch=0,
            grid=grid,
            in_specs=[pl.BlockSpec((tr, _LANE), lambda i: (i, 0))],
            out_specs=pl.BlockSpec((tr, _LANE), lambda i: (i, 0)),
        ),
        compiler_params=pltpu.CompilerParams(
            dimension_semantics=("parallel",),
            vmem_limit_bytes=_VMEM_LIMIT_BYTES,
        ),
        cost_estimate=pl.CostEstimate(
            flops=9 * total_elems,
            transcendentals=2 * total_elems,
            bytes_accessed=2 * total_elems * itemsize,
        ),
    )(x2d)


def mish(x, *, min_pallas_elements=_MIN_PALLAS_ELEMENTS):
    """Elementwise Mish, matching torch `x * tanh(F.softplus(x))`."""
    total = x.size
    if total == 0:
        return x
    # A standalone pallas_call cannot fuse with the producer; for small tensors
    # plain jnp (fusable by XLA) avoids an extra full HBM round trip.
    if total < min_pallas_elements:
        return _mish_jnp(x)

    orig_shape = x.shape
    flat = x.reshape(-1)                 # metadata-only for contiguous layouts
    aligned = (total // _LANE) * _LANE
    tail = total - aligned
    if aligned == 0:
        return _mish_jnp(x)

    n_rows = aligned // _LANE
    head = flat if tail == 0 else flat[:aligned]
    out2d = _mish_pallas_2d(head.reshape(n_rows, _LANE), aligned)
    out_flat = out2d.reshape(-1)
    if tail:
        # <128-element tail handled with plain jnp: no full-array pad/slice.
        out_flat = jnp.concatenate([out_flat, _mish_jnp(flat[aligned:])])
    return out_flat.reshape(orig_shape)


if __name__ == "__main__":
    key = jax.random.PRNGKey(0)
    k0, k1, k2 = jax.random.split(key, 3)

    # NCHW shape implied by the PyTorch module: batch=2, channels=4, 16x16.
    x = jax.random.normal(k0, (2, 4, 16, 16), dtype=jnp.float32)
    ref = _mish_jnp(x)

    # min_pallas_elements=0 forces the Pallas path at this small test size
    # (the production default routes such tensors to the fusable jnp fallback).
    y = mish(x, min_pallas_elements=0)
    jax.block_until_ready(y)
    assert y.shape == x.shape and y.dtype == x.dtype
    err = float(jnp.max(jnp.abs(y - ref)))
    assert err < 1e-4, f"max abs err {err}"

    # bf16 input: exercises the byte/dtype-aware block sizing and dtype round trip.
    xb = jax.random.normal(k1, (2, 4, 16, 16), dtype=jnp.bfloat16)
    yb = mish(xb, min_pallas_elements=0)
    jax.block_until_ready(yb)
    assert yb.dtype == jnp.bfloat16 and yb.shape == xb.shape
    errb = float(jnp.max(jnp.abs(yb.astype(jnp.float32)
                                 - _mish_jnp(xb.astype(jnp.float32)))))
    assert errb < 5e-2, f"bf16 max abs err {errb}"

    # Misaligned total (3*5*16*15 = 3600 = 28*128 + 16): aligned prefix through
    # Pallas (2 grid steps, partial trailing block), 16-element tail through jnp.
    x2 = jax.random.normal(k2, (3, 5, 16, 15), dtype=jnp.float32)
    y2 = mish(x2, min_pallas_elements=0)
    jax.block_until_ready(y2)
    err2 = float(jnp.max(jnp.abs(y2 - _mish_jnp(x2))))
    assert err2 < 1e-4, f"tail-path max abs err {err2}"

    # Default small-tensor fallback (plain jnp) still matches.
    y3 = mish(x)
    jax.block_until_ready(y3)
    err3 = float(jnp.max(jnp.abs(y3 - ref)))
    assert err3 < 1e-5, f"fallback max abs err {err3}"

    print("KERNEL_OK")
</pallas_src>

<mosaic_0001>
module attributes {stable_mosaic.version = 11 : i64} {
  func.func @_mish_kernel(%arg0: i32, %arg1: memref<8x128xf32, #tpu.memory_space<vmem>>, %arg2: memref<8x128xf32, #tpu.memory_space<vmem>>) attributes {dimension_semantics = [#tpu.dimension_semantics<parallel>], iteration_bounds = array<i64: 2>, scalar_prefetch = 0 : i64, scratch_operands = 0 : i64, tpu.core_type = #tpu.core_type<tc>, window_params = [{transform_indices = @transform_0, window_bounds = array<i64: 8, 128>}, {transform_indices = @transform_1, window_bounds = array<i64: 8, 128>}]} {
    %c0 = arith.constant 0 : index
    %c0_0 = arith.constant 0 : index
    %0 = vector.load %arg1[%c0, %c0_0] : memref<8x128xf32, #tpu.memory_space<vmem>>, vector<8x128xf32>
    %cst = arith.constant 2.000000e+01 : f32
    %1 = vector.broadcast %cst : f32 to vector<8x128xf32>
    %2 = arith.minimumf %0, %1 : vector<8x128xf32>
    %3 = math.exp %2 : vector<8x128xf32>
    %cst_1 = arith.constant 2.000000e+00 : f32
    %4 = vector.broadcast %cst_1 : f32 to vector<8x128xf32>
    %5 = arith.addf %3, %4 : vector<8x128xf32>
    %6 = arith.mulf %3, %5 : vector<8x128xf32>
    %cst_2 = arith.constant 2.000000e+00 : f32
    %7 = vector.broadcast %cst_2 : f32 to vector<8x128xf32>
    %8 = arith.addf %6, %7 : vector<8x128xf32>
    %9 = tpu.reciprocal %8 {approx = true} : vector<8x128xf32> -> vector<8x128xf32>
    %10 = arith.mulf %8, %9 : vector<8x128xf32>
    %cst_3 = arith.constant 2.000000e+00 : f32
    %11 = vector.broadcast %cst_3 : f32 to vector<8x128xf32>
    %12 = arith.subf %11, %10 : vector<8x128xf32>
    %13 = arith.mulf %9, %12 : vector<8x128xf32>
    %14 = arith.mulf %6, %13 : vector<8x128xf32>
    %15 = arith.mulf %0, %14 : vector<8x128xf32>
    %cst_4 = arith.constant 2.000000e+01 : f32
    %16 = vector.broadcast %cst_4 : f32 to vector<8x128xf32>
    %17 = arith.cmpf ogt, %0, %16 : vector<8x128xf32>
    %18 = arith.select %17, %0, %15 : vector<8x128xi1>, vector<8x128xf32>
    %c0_5 = arith.constant 0 : index
    %c0_6 = arith.constant 0 : index
    %19 = vector.load %arg2[%c0_5, %c0_6] : memref<8x128xf32, #tpu.memory_space<vmem>>, vector<8x128xf32>
    tpu.vector_store %arg2[%c0_5, %c0_6], %18 {strides = array<i32>} : memref<8x128xf32, #tpu.memory_space<vmem>>, vector<8x128xf32>,
    return
  }
  func.func @transform_0(%arg0: i32) -> (i32, i32) {
    %c0_i32 = arith.constant 0 : i32
    %c0_i32_0 = arith.constant 0 : i32
    return %arg0, %c0_i32 : i32, i32
  }
  func.func @transform_1(%arg0: i32) -> (i32, i32) {
    %c0_i32 = arith.constant 0 : i32
    %c0_i32_0 = arith.constant 0 : i32
    return %arg0, %c0_i32 : i32, i32
  }
}

</mosaic_0001>

<bundles_post_ra>
// kernel: tpu_custom_call.1
= control target key start
LH: loop header
LB: loop body
LE: loop exit
PB: predicated region body
PF: predicated region fallthrough
CT: control target
= control target key end

     0   :  { %6 = vsyncpa [#allocation3], 0  ;;  %s547_s0 = inlined_call_operand.hbm [shape: f32[16,128], index: 0, kind: input, shape index: {}]   ;;  %s548_s1 = inlined_call_operand.hbm [shape: f32[16,128], index: 1, kind: output, shape index: {}]  }
   0x1   :  { %8 = vsyncpa [#allocation3 + $0x1], 0 }
   0x2   :  { %9 = vsyncpa [#allocation4], 0 }
   0x3   :  { %11 = vsyncpa [#allocation4 + $0x1], 0  ;;  %s400_s6 = smov 0   ;;  %s402_s7 = smov 0  }
   0x4   :  { %s404_s8 = smov 0   ;;  %s406_s9 = smov 0  }
   0x5 LB: > { %s421_s10 = sadd.s32 4294967295, %s386_s9   ;;  %s232_s11 = sadd.s32 4294967294, %s386_s9   ;;  %s386_s9 = sphi %s406_s9, %s565_s9   ;;  %s382_s8 = sphi %s404_s8, %s564_s8   ;;  %s378_s7 = sphi %s402_s7, %s563_s7   ;;  %s374_s6 = sphi %s400_s6, %s562_s6  }
   0x6   : > { %s425_s12 = sadd.s32 1, %s386_s9   ;;  %s24_s13 = sadd.s32 1, %s382_s8 }
   0x7   : > { %s21_s14 = ssub.s32 %s386_s9, %s425_s12  ;;  %p31_p0 = scmp.ne.s32.totalorder %s382_s8, %s378_s7 }
   0x8   : > { %p22_p1 = scmp.eq.s32.totalorder %s21_s14, 0  ;;  %p32_p2 = scmp.eq.s32.totalorder %s386_s9, 0 }
   0x9   : > { %p37_p3 = scmp.ne.s32.totalorder %s378_s7, %s374_s6  ;;  %p38_p4 = scmp.eq.s32.totalorder %s421_s10, 0 }
   0xa   : > { %s437_s15 = scalar_select %p22_p1, %s382_s8, %s24_s13  }
   0xb   : > { %p439_p5 = por %p32_p2, %p31_p0  ;;  %p443_p6 = por %p38_p4, %p37_p3 }
   0xc   : > { %p61_p7 = scmp.eq.s32.totalorder %s421_s10, 1  ;;  %p67_p8 = scmp.eq.s32.totalorder %s232_s11, 1 }
   0xd   : > { %s552_s17 = scalar_select %p443_p6, 1, 0 }
   0xe   : > { %p256_p10 = scmp.lt.s32.totalorder %s386_s9, 2  ;;  %p450_p11 = por %p61_p7, %p31_p0 }
   0xf   : > { %p454_p12 = por %p67_p8, %p37_p3  ;;  %s87_s20 = sand.u32 1, %s382_s8  }
  0x10   : > { %s553_s18 = scalar_select %p450_p11, 1, 0 }
  0x11   : > { %s554_s19 = scalar_select %p454_p12, 1, 0 }
  0x12   : > { %s236_s21 = sshll.u32 %s386_s9, 7  ;;  %s235_s22 = sshll.u32 %s87_s20, 3 }
  0x13   : > { %s463_s25 = scalar_lea.hbm %s547_s0, %s236_s21  ;;  %s91_s26 = scalar_lea.vmem [#allocation2], %s235_s22 }
  0x14   : > { %s98_s27 = sshll.u32 %s91_s26, 4  ;;  %p467_p13 = pnand %p256_p10, %p439_p5  ;;  %s471_s27 = int_to_ptr.vmem [resolvable:$true] %s98_s27 }
  0x15   : > { %s88_s29 = scalar_lea.sflag [#allocation3], %s87_s20  ;;  %s294_s30 = scalar_lea.hbm %s463_s25, 128 }
  0x16   : > { %p295_p2 = scmp.ne.s32.totalorder %s463_s25, %s294_s30  ;;  %p296_p3 = pneg %p467_p13 }
  0x17   : > { %s299_s4 = scalar_lea.hbm %s547_s0, 256  ;;  %p300_p5 = scmp.lt.s32.totalorder %s463_s25, %s547_s0 }
  0x18   : > { %p297_p4 = pnand %p296_p3, %p295_p2  ;;  %p301_p8 = scmp.lt.s32.totalorder %s299_s4, %s294_s30 }
  0x1a   : > { %p298_p7 = pneg %p297_p4  ;;  %p302_p10 = por %p301_p8, %p300_p5 }
  0x1c   : > { %p303_p9 = pnand %p302_p10, %p298_p7 }
  0x1e   : > { %306 = shalt.err (!%p303_p9)
}
  0x1f   : > { %s307_s13 = scalar_lea.vmem %s471_s27, 128  ;;  %s388_s14 = smov [#allocation2]  }
  0x20   : > { %p308_p0 = scmp.ne.s32.totalorder %s471_s27, %s307_s13  ;;  %s312_s16 = sshll.u32 %s388_s14, 4  ;;  %s313_s16 = int_to_ptr.vmem [resolvable:$false] %s312_s16 }
  0x21   : > { %s314_s20 = scalar_lea.vmem %s313_s16, 256  ;;  %p315_p4 = scmp.lt.s32.totalorder %s471_s27, %s313_s16 }
  0x22   : > { %p310_p1 = pnand %p308_p0, %p296_p3  ;;  %p316_p12 = scmp.lt.s32.totalorder %s314_s20, %s307_s13 }
  0x24   : > { %p311_p2 = pneg %p310_p1  ;;  %p317_p11 = por %p316_p12, %p315_p4 }
  0x26   : > { %p318_p6 = pnand %p317_p11, %p311_p2 }
  0x28   : > { %321 = shalt.err (!%p318_p6)
}
  0x29   : > { %251 = dma.hbm_to_vmem [thread:$0]  (!%p467_p13), %s463_s25, 128, %s471_s27, %s88_s29  }
  0x2a   : > { %p556_p9 = scmp.lt.s32.totalorder %s386_s9, 3  ;;  %p557_p7 = scmp.ge.s32.totalorder %s386_s9, 1 }
  0x2c   : > { %p104_p0 = pnand %p557_p7, %p556_p9 }
  0x2d   : > { %s498_s21 = sand.u32 (!%p104_p0), 1, %s378_s7   ;;  %p558_p6 = scmp.ne.s32.totalorder (!%p104_p0), %s552_s17, 0 }
  0x2e   : > { %107 = sbr.rel (%p104_p0) target bundleno = 115 (0x73), region = 24  ;;  %s238_s22 = sshll.u32 (!%p104_p0), %s498_s21, 3 }
  0x2f   : > { %s110_s23 = scalar_lea.sflag (!%p104_p0), [#allocation3], %s498_s21  ;;  %s113_s24 = scalar_lea.vmem (!%p104_p0), [#allocation2], %s238_s22 }
  0x33   : > { %365 = dma.done.wait (%p558_p6), %s110_s23, 128  }
  0x34   : > { %367 = vsyncadd (%p558_p6), %s110_s23, 4294967168  ;;  %v132_v0 = vld [vmem:[%s113_s24] sm:$0xff]  ;;  %s131_s25 = scalar_lea.vmem [#allocation5], %s238_s22  ;;  %s241_s26 = sshll.u32 %s421_s10, 7 }
  0x35   : > { %v133_v1 = vmin.f32 %v132_v0, 20.0  ;;  %s162_s17 = sshll.u32 %s131_s25, 4  ;;  %vm145_vm0 = vcmp.gt.f32.partialorder %v132_v0, 20.0  ;;  %s160_s29 = scalar_lea.hbm %s548_s1, %s241_s26  ;;  %s507_s17 = int_to_ptr.vmem [resolvable:$true] %s162_s17 }
  0x36   : > { %s149_s30 = scalar_lea.sflag [#allocation4], %s498_s21  ;;  %s322_s2 = scalar_lea.vmem %s507_s17, 128 }
  0x37   : > { %v134_v2 = vmul.f32 1.442695, %v133_v1  ;;  %p323_p11 = scmp.ne.s32.totalorder %s507_s17, %s322_s2  ;;  %p559_p12 = scmp.ne.s32.totalorder %s553_s18, 0 }
  0x38   : > { %s389_s10 = smov [#allocation5]  }
  0x39   : > { %290 = vpow2.f32 %v134_v2  ;;  %p324_p13 = pnand %p323_p11, %p559_p12  ;;  %s326_s3 = sshll.u32 %s389_s10, 4  ;;  %s327_s3 = int_to_ptr.vmem [resolvable:$false] %s326_s3 }
  0x3a   : > { %s328_s4 = scalar_lea.vmem %s327_s3, 256  ;;  %p329_p3 = scmp.lt.s32.totalorder %s507_s17, %s327_s3 }
  0x3b   : > { %p325_p1 = pneg %p324_p13  ;;  %p330_p5 = scmp.lt.s32.totalorder %s328_s4, %s322_s2 }
  0x3d   : > { %p331_p8 = por %p330_p5, %p329_p3 }
  0x3f   : > { %p332_p10 = pnand %p331_p8, %p325_p1 }
  0x46   : > { %v291_v3 = vpop.eup %290 }
  0x47   : > { %v136_v4 = vadd.f32 2.0, %v291_v3 }
  0x49   : > { %v137_v5 = vmul.f32 %v291_v3, %v136_v4 }
  0x4b   : > { %v138_v6 = vadd.f32 2.0, %v137_v5 }
  0x4d   : > { %292 = vrcp.f32 %v138_v6 }
  0x5a   : > { %v293_v7 = vpop.eup %292 }
  0x5b   : > { %v140_v8 = vmul.f32 %v293_v7, %v138_v6 }
  0x5d   : > { %v141_v9 = vsub.f32 2.0, %v140_v8 }
  0x5f   : > { %v142_v10 = vmul.f32 %v293_v7, %v141_v9 }
  0x61   : > { %v143_v11 = vmul.f32 %v142_v10, %v137_v5 }
  0x63   : > { %v144_v12 = vmul.f32 %v143_v11, %v132_v0 }
  0x65   : > { %v146_v13 = vsel %vm145_vm0, %v132_v0, %v144_v12 }
  0x66   : > { %147 = vst [vmem:[%s131_s25] sm:$0xff] %v146_v13 }
  0x67   : > { %335 = shalt.err (!%p332_p10)
}
  0x68   : > { %s336_s5 = scalar_lea.hbm %s160_s29, 128  ;;  %s340_s14 = scalar_lea.hbm %s548_s1, 256 }
  0x69   : > { %p337_p2 = scmp.ne.s32.totalorder %s160_s29, %s336_s5  ;;  %p341_p7 = scmp.lt.s32.totalorder %s160_s29, %s548_s1 }
  0x6a   : > { %p342_p0 = scmp.lt.s32.totalorder %s340_s14, %s336_s5 }
  0x6b   : > { %p338_p4 = pnand %p337_p2, %p559_p12 }
  0x6c   : > { %p343_p6 = por %p342_p0, %p341_p7 }
  0x6d   : > { %p339_p9 = pneg %p338_p4 }
  0x6f   : > { %p344_p11 = pnand %p343_p6, %p339_p9 }
  0x71   : > { %347 = shalt.err (!%p344_p11)
}
  0x72   : > { %246 = dma.vmem_to_hbm [thread:$0]  (%p559_p12), %s507_s17, 128, %s160_s29, %s149_s30  }
  0x73 PF: > { %s174_s21 = sand.u32 1, %s374_s6   ;;  %p560_p13 = scmp.ne.s32.totalorder %s554_s19, 0 }
  0x74   : > { %p561_p1 = scmp.ge.s32.totalorder %s386_s9, 2  ;;  %s175_s22 = scalar_lea.sflag [#allocation4], %s174_s21 }
  0x76   : > { %p253_p3 = pnand %p561_p1, %p560_p13 }
  0x78   : > { %p254_p5 = pneg %p253_p3 }
  0x7a   : > { %369 = dma.done.wait (%p254_p5), %s175_s22, 128  }
  0x7b   : > { %371 = vsyncadd (%p254_p5), %s175_s22, 4294967168  ;;  %p14_p8 = scmp.ge.s32.totalorder %s425_s12, 4   ;;  %s562_s6 = smov %s378_s7 }
  0x7c   : > { %s563_s7 = smov %s382_s8  ;;  %s564_s8 = smov %s437_s15 }
  0x7d   : > { %s565_s9 = smov %s425_s12  ;;  %16 = sbr.rel (!%p14_p8) target bundleno = 5 (0x5), region = 69 }
  0x82   :  { %180 = vsyncpa [#allocation3], 1 }
  0x83   :  { %182 = vsyncpa [#allocation3 + $0x1], 1 }
  0x84   :  { %183 = vsyncpa [#allocation4], 1 }
  0x85   :  { %185 = vsyncpa [#allocation4 + $0x1], 1 }

</bundles_post_ra>
